<compile_context>
chip_gen: v7x
topology: tpu7x:2x2x1
jax: 0.10.0
libtpu: 0.0.40
codegen_flags: <defaults>
</compile_context>

<pallas_src>
import functools

import jax
import jax.numpy as jnp
from jax.experimental import pallas as pl
from jax.experimental.pallas import tpu as pltpu


def _round_up(x, m):
    return ((x + m - 1) // m) * m


# ----------------------------- Pallas kernel --------------------------------

def _rpn_head_kernel(x_ref, wconv_ref, bconv_ref, whead_ref, bhead_ref, out_ref,
                     *, wp, lout):
    # x_ref:     (1, Cin_pad, Lin_pad)        bf16 -- one padded, flattened image
    # wconv_ref: (Cf, 9*Cin_pad)              bf16 -- 3x3 conv weights, tap-major columns
    # bconv_ref: (Cf, 1)                      f32
    # whead_ref: (Chead_pad, Cf)              bf16 -- fused 1x1 cls+reg weights
    # bhead_ref: (Chead_pad, 1)               f32
    # out_ref:   (1, Chead_pad, Lout_pad)     f32
    x = x_ref[0]                                               # (Cin_pad, Lin_pad)

    # In-kernel im2col: 9 statically lane-shifted views of the flattened padded image,
    # stacked along the contraction (sublane) axis -> (9*Cin_pad, Lout_pad).
    # Cin_pad is a full packed-bf16 sublane group, so each slice concatenates aligned.
    cols = jnp.concatenate(
        [x[:, dy * wp + dx: dy * wp + dx + lout]
         for dy in range(3) for dx in range(3)],
        axis=0)

    # 3x3 conv == one matmul; f32 accumulation on the MXU.  Keep the result as a local
    # value (no VMEM scratch round trip); bias + ReLU epilogue on the VPU in f32.
    feat = jnp.dot(wconv_ref[...], cols, preferred_element_type=jnp.float32)
    feat = jnp.maximum(feat + bconv_ref[...], 0.0)             # (Cf, Lout_pad) f32

    # Fused 1x1 cls+reg heads: single matmul, bf16 inputs, f32 accumulate.
    head = jnp.dot(whead_ref[...], feat.astype(jnp.bfloat16),
                   preferred_element_type=jnp.float32)
    out_ref[0] = head + bhead_ref[...]


# ------------------------------ wrapper --------------------------------------

def rpn_forward(feats, params):
    """All-levels forward: feats = list of (N, Cin, H_l, W_l) -> (cls_list, reg_list),
    matching RPNHead.forward / multi_apply.  One pallas_call covers every level and
    every image in the batch."""
    wc, bc, wh, bh = params["wc"], params["bc"], params["wh"], params["bh"]
    cls_out, reg_out = params["cls_out"], params["reg_out"]
    Cin, Cin_pad = params["cin"], params["cin_pad"]
    Cf = wc.shape[0]
    Chead_pad = wh.shape[0]

    shapes = [f.shape for f in feats]
    N = shapes[0][0]
    assert all(s[0] == N and s[1] == Cin for s in shapes)

    # One static padded width for every level (widest level), so the im2col shifts are
    # compile-time constants shared by all grid steps.
    W_max = max(s[3] for s in shapes)
    H_max = max(s[2] for s in shapes)
    Wp = W_max + 2                                  # width after conv pad=1 on both sides
    Lout = H_max * Wp                               # flat output positions per tile
    Lout_pad = _round_up(Lout, 128)                 # lane-dense output blocks
    Lin_pad = _round_up(Lout_pad + 2 * Wp + 2, 128) # covers the max shifted index

    # --- glue: one (level, image) tile per grid step, level-major.  No halo duplication
    # (whole images), just pad + flatten + concat.
    tiles = []
    for x in feats:
        _, _, H, W = x.shape
        xp = jnp.pad(x.astype(jnp.float32),
                     ((0, 0), (0, 0), (1, 1), (1, W_max - W + 1)))   # (N, Cin, H+2, Wp)
        flat = xp.reshape(N, Cin, (H + 2) * Wp)
        flat = jnp.pad(flat, ((0, 0), (0, Cin_pad - Cin),
                              (0, Lin_pad - flat.shape[-1])))
        tiles.append(flat)
    x_tiles = jnp.concatenate(tiles, axis=0).astype(jnp.bfloat16)    # (L*N, Cin_pad, Lin_pad)
    num_tiles = x_tiles.shape[0]

    kernel = functools.partial(_rpn_head_kernel, wp=Wp, lout=Lout_pad)

    flops_per_tile = (2 * Lout_pad * Cf * 9 * Cin_pad
                      + 2 * Lout_pad * Chead_pad * Cf)
    bytes_accessed = int(x_tiles.size * 2
                         + num_tiles * Chead_pad * Lout_pad * 4
                         + wc.size * 2 + wh.size * 2 + bc.size * 4 + bh.size * 4)
    cost = pl.CostEstimate(flops=int(num_tiles * flops_per_tile),
                           transcendentals=0,
                           bytes_accessed=bytes_accessed)

    grid_spec = pltpu.PrefetchScalarGridSpec(
        num_scalar_prefetch=0,
        grid=(num_tiles,),
        in_specs=[
            pl.BlockSpec((1, Cin_pad, Lin_pad), lambda t: (t, 0, 0)),
            pl.BlockSpec(wc.shape, lambda t: (0, 0)),
            pl.BlockSpec(bc.shape, lambda t: (0, 0)),
            pl.BlockSpec(wh.shape, lambda t: (0, 0)),
            pl.BlockSpec(bh.shape, lambda t: (0, 0)),
        ],
        out_specs=pl.BlockSpec((1, Chead_pad, Lout_pad), lambda t: (t, 0, 0)),
    )

    out = pl.pallas_call(
        kernel,
        out_shape=jax.ShapeDtypeStruct((num_tiles, Chead_pad, Lout_pad), jnp.float32),
        grid_spec=grid_spec,
        compiler_params=pltpu.CompilerParams(
            dimension_semantics=("parallel",),          # num_tiles steps -> v7x 2-TC shard
            vmem_limit_bytes=32 * 1024 * 1024),
        cost_estimate=cost,
    )(x_tiles, wc, bc, wh, bh)

    # --- glue: output is already channel-major per tile; slice off flat-layout padding
    # and split the fused heads.  NO transpose.
    cls_list, reg_list = [], []
    for l, s in enumerate(shapes):
        H, W = s[2], s[3]
        o = out[l * N:(l + 1) * N, :, :H * Wp].reshape(N, Chead_pad, H, Wp)[:, :, :, :W]
        cls_list.append(o[:, :cls_out])
        reg_list.append(o[:, cls_out:cls_out + reg_out])
    return cls_list, reg_list


# ------------------------- parameter construction ---------------------------

def _make_params(key, in_channels, feat_channels, num_anchors, use_sigmoid_cls=False):
    """Random params, stored both in PyTorch conv layout (for the reference) and in the
    kernel's channel-major / fused-head matmul layout."""
    cls_out = num_anchors if use_sigmoid_cls else num_anchors * 2
    reg_out = num_anchors * 4
    k1, k2, k3, k4, k5, k6 = jax.random.split(key, 6)
    # PyTorch layouts: Conv2d weight (Cout, Cin, kh, kw)
    w_conv = 0.01 * jax.random.normal(k1, (feat_channels, in_channels, 3, 3), jnp.float32)
    w_cls = 0.01 * jax.random.normal(k2, (cls_out, feat_channels, 1, 1), jnp.float32)
    w_reg = 0.01 * jax.random.normal(k3, (reg_out, feat_channels, 1, 1), jnp.float32)
    b_conv = 0.01 * jax.random.normal(k4, (feat_channels,), jnp.float32)
    b_cls = 0.01 * jax.random.normal(k5, (cls_out,), jnp.float32)
    b_reg = 0.01 * jax.random.normal(k6, (reg_out,), jnp.float32)
    torch_layout = (w_conv, b_conv, w_cls, b_cls, w_reg, b_reg)

    # Kernel layout.  Cin padded to a full packed-bf16 sublane group (16) so each im2col
    # tap is an aligned sublane block; head channels padded to a multiple of 8.
    cin_pad = _round_up(in_channels, 16)
    chead = cls_out + reg_out
    chead_pad = _round_up(chead, 8)

    # 3x3 weights: columns ordered (tap = dy*3+dx, then channel) -- MUST match the
    # in-kernel im2col concat order in _rpn_head_kernel.
    wc = jnp.transpose(w_conv, (0, 2, 3, 1))                      # (Cf, dy, dx, Cin)
    wc = jnp.pad(wc, ((0, 0), (0, 0), (0, 0), (0, cin_pad - in_channels)))
    wc = wc.reshape(feat_channels, 9 * cin_pad).astype(jnp.bfloat16)

    # Fused 1x1 heads along the output-channel axis (cls rows first, then reg rows).
    wh = jnp.concatenate([w_cls[:, :, 0, 0], w_reg[:, :, 0, 0]], axis=0)
    wh = jnp.pad(wh, ((0, chead_pad - chead), (0, 0))).astype(jnp.bfloat16)

    bc = b_conv.reshape(-1, 1)                                    # (Cf, 1) f32
    bh = jnp.pad(jnp.concatenate([b_cls, b_reg], axis=0),
                 (0, chead_pad - chead)).reshape(-1, 1)           # (Chead_pad, 1) f32

    kernel_params = dict(wc=wc, bc=bc, wh=wh, bh=bh,
                         cls_out=cls_out, reg_out=reg_out,
                         cin=in_channels, cin_pad=cin_pad)
    return kernel_params, torch_layout


# ----------------------------- JAX reference ---------------------------------

def _reference_single(x, torch_params):
    w_conv, b_conv, w_cls, b_cls, w_reg, b_reg = torch_params
    dn = ('NCHW', 'OIHW', 'NCHW')
    feat = jax.lax.conv_general_dilated(x, w_conv, (1, 1), ((1, 1), (1, 1)),
                                        dimension_numbers=dn)
    feat = jnp.maximum(feat + b_conv[None, :, None, None], 0.0)
    cls = jax.lax.conv_general_dilated(feat, w_cls, (1, 1), 'VALID',
                                       dimension_numbers=dn) + b_cls[None, :, None, None]
    reg = jax.lax.conv_general_dilated(feat, w_reg, (1, 1), 'VALID',
                                       dimension_numbers=dn) + b_reg[None, :, None, None]
    return cls, reg


# --------------------------------- main ---------------------------------------

if __name__ == "__main__":
    key = jax.random.PRNGKey(0)
    k_param, k_x0, k_x1 = jax.random.split(key, 3)

    # Small synthetic config consistent with RPNHead(in_channels=4, feat_channels=32)
    in_channels = 4
    feat_channels = 32
    anchor_scales = [8, 16, 32]
    anchor_ratios = [0.5, 1.0, 2.0]
    num_anchors = len(anchor_scales) * len(anchor_ratios)    # 9
    use_sigmoid_cls = False                                   # cls out = 18, reg out = 36

    params, torch_params = _make_params(k_param, in_channels, feat_channels,
                                        num_anchors, use_sigmoid_cls)

    # Two pyramid levels; the head is applied per level with shared weights.
    feats = [
        jax.random.normal(k_x0, (2, in_channels, 16, 16), jnp.float32),
        jax.random.normal(k_x1, (2, in_channels, 8, 8), jnp.float32),
    ]

    cls_scores, bbox_preds = rpn_forward(feats, params)
    jax.block_until_ready(cls_scores)
    jax.block_until_ready(bbox_preds)

    # Correctness check against plain-JAX (f32) convolution reference.
    # Tolerance accounts for bf16 MXU inputs (f32 accumulation).
    ok = True
    for x, cls, reg in zip(feats, cls_scores, bbox_preds):
        cls_ref, reg_ref = _reference_single(x, torch_params)
        ok &= bool(jnp.allclose(cls, cls_ref, atol=2e-3, rtol=2e-2))
        ok &= bool(jnp.allclose(reg, reg_ref, atol=2e-3, rtol=2e-2))
        assert cls.shape == (x.shape[0], num_anchors * 2, x.shape[2], x.shape[3])
        assert reg.shape == (x.shape[0], num_anchors * 4, x.shape[2], x.shape[3])

    if ok:
        print("KERNEL_OK")
    else:
        print("KERNEL_MISMATCH")
</pallas_src>

<mosaic_0001>
module attributes {stable_mosaic.version = 11 : i64} {
  func.func @_rpn_head_kernel(%arg0: i32, %arg1: memref<1x16x512xbf16, #tpu.memory_space<vmem>>, %arg2: memref<32x144xbf16, #tpu.memory_space<vmem>>, %arg3: memref<32x1xf32, #tpu.memory_space<vmem>>, %arg4: memref<56x32xbf16, #tpu.memory_space<vmem>>, %arg5: memref<56x1xf32, #tpu.memory_space<vmem>>, %arg6: memref<1x56x384xf32, #tpu.memory_space<vmem>>) attributes {dimension_semantics = [#tpu.dimension_semantics<parallel>], iteration_bounds = array<i64: 4>, scalar_prefetch = 0 : i64, scratch_operands = 0 : i64, tpu.core_type = #tpu.core_type<tc>, window_params = [{transform_indices = @transform_0, window_bounds = array<i64: 1, 16, 512>}, {pipeline_mode = #tpu.pipeline_mode<synchronous>, transform_indices = @transform_1, window_bounds = array<i64: 32, 144>}, {pipeline_mode = #tpu.pipeline_mode<synchronous>, transform_indices = @transform_2, window_bounds = array<i64: 32, 1>}, {pipeline_mode = #tpu.pipeline_mode<synchronous>, transform_indices = @transform_3, window_bounds = array<i64: 56, 32>}, {pipeline_mode = #tpu.pipeline_mode<synchronous>, transform_indices = @transform_4, window_bounds = array<i64: 56, 1>}, {transform_indices = @transform_5, window_bounds = array<i64: 1, 56, 384>}]} {
    %c0 = arith.constant 0 : index
    %c0_0 = arith.constant 0 : index
    %c0_1 = arith.constant 0 : index
    %0 = vector.load %arg1[%c0, %c0_0, %c0_1] : memref<1x16x512xbf16, #tpu.memory_space<vmem>>, vector<1x16x512xbf16>
    %1 = vector.shape_cast %0 : vector<1x16x512xbf16> to vector<16x512xbf16>
    %2 = vector.extract_strided_slice %1 {offsets = [0, 0], sizes = [16, 384], strides = [1, 1]} : vector<16x512xbf16> to vector<16x384xbf16>
    %3 = vector.extract_strided_slice %1 {offsets = [0, 1], sizes = [16, 384], strides = [1, 1]} : vector<16x512xbf16> to vector<16x384xbf16>
    %4 = vector.extract_strided_slice %1 {offsets = [0, 2], sizes = [16, 384], strides = [1, 1]} : vector<16x512xbf16> to vector<16x384xbf16>
    %5 = vector.extract_strided_slice %1 {offsets = [0, 18], sizes = [16, 384], strides = [1, 1]} : vector<16x512xbf16> to vector<16x384xbf16>
    %6 = vector.extract_strided_slice %1 {offsets = [0, 19], sizes = [16, 384], strides = [1, 1]} : vector<16x512xbf16> to vector<16x384xbf16>
    %7 = vector.extract_strided_slice %1 {offsets = [0, 20], sizes = [16, 384], strides = [1, 1]} : vector<16x512xbf16> to vector<16x384xbf16>
    %8 = vector.extract_strided_slice %1 {offsets = [0, 36], sizes = [16, 384], strides = [1, 1]} : vector<16x512xbf16> to vector<16x384xbf16>
    %9 = vector.extract_strided_slice %1 {offsets = [0, 37], sizes = [16, 384], strides = [1, 1]} : vector<16x512xbf16> to vector<16x384xbf16>
    %10 = vector.extract_strided_slice %1 {offsets = [0, 38], sizes = [16, 384], strides = [1, 1]} : vector<16x512xbf16> to vector<16x384xbf16>
    %11 = tpu.concatenate %2, %3, %4, %5, %6, %7, %8, %9, %10 in 0 : vector<16x384xbf16>, vector<16x384xbf16>, vector<16x384xbf16>, vector<16x384xbf16>, vector<16x384xbf16>, vector<16x384xbf16>, vector<16x384xbf16>, vector<16x384xbf16>, vector<16x384xbf16> -> vector<144x384xbf16>
    %c0_2 = arith.constant 0 : index
    %c0_3 = arith.constant 0 : index
    %12 = vector.load %arg2[%c0_2, %c0_3] : memref<32x144xbf16, #tpu.memory_space<vmem>>, vector<32x144xbf16>
    %cst = arith.constant dense<0.000000e+00> : vector<32x384xf32>
    %13 = tpu.matmul %12, %11, %cst {dimension_numbers = #tpu.dot_dimension_numbers<[1], [0], [0], [1], [0, 0, 1, 1], [], []>} : vector<32x144xbf16>, vector<144x384xbf16>, vector<32x384xf32> -> vector<32x384xf32>
    %c0_4 = arith.constant 0 : index
    %c0_5 = arith.constant 0 : index
    %14 = vector.load %arg3[%c0_4, %c0_5] : memref<32x1xf32, #tpu.memory_space<vmem>>, vector<32x1xf32>
    %15 = vector.broadcast %14 : vector<32x1xf32> to vector<32x384xf32>
    %16 = arith.addf %13, %15 : vector<32x384xf32>
    %cst_6 = arith.constant 0.000000e+00 : f32
    %17 = vector.broadcast %cst_6 : f32 to vector<32x384xf32>
    %18 = arith.maximumf %16, %17 : vector<32x384xf32>
    %c0_7 = arith.constant 0 : index
    %c0_8 = arith.constant 0 : index
    %19 = vector.load %arg4[%c0_7, %c0_8] : memref<56x32xbf16, #tpu.memory_space<vmem>>, vector<56x32xbf16>
    %20 = arith.truncf %18 : vector<32x384xf32> to vector<32x384xbf16>
    %cst_9 = arith.constant dense<0.000000e+00> : vector<56x384xf32>
    %21 = tpu.matmul %19, %20, %cst_9 {dimension_numbers = #tpu.dot_dimension_numbers<[1], [0], [0], [1], [0, 0, 1, 1], [], []>} : vector<56x32xbf16>, vector<32x384xbf16>, vector<56x384xf32> -> vector<56x384xf32>
    %c0_10 = arith.constant 0 : index
    %c0_11 = arith.constant 0 : index
    %22 = vector.load %arg5[%c0_10, %c0_11] : memref<56x1xf32, #tpu.memory_space<vmem>>, vector<56x1xf32>
    %23 = vector.broadcast %22 : vector<56x1xf32> to vector<56x384xf32>
    %24 = arith.addf %21, %23 : vector<56x384xf32>
    %c0_12 = arith.constant 0 : index
    %c0_13 = arith.constant 0 : index
    %c0_14 = arith.constant 0 : index
    %25 = vector.load %arg6[%c0_12, %c0_13, %c0_14] : memref<1x56x384xf32, #tpu.memory_space<vmem>>, vector<1x56x384xf32>
    %26 = vector.shape_cast %25 : vector<1x56x384xf32> to vector<56x384xf32>
    %27 = vector.shape_cast %24 : vector<56x384xf32> to vector<1x56x384xf32>
    tpu.vector_store %arg6[%c0_12, %c0_13, %c0_14], %27 {strides = array<i32>} : memref<1x56x384xf32, #tpu.memory_space<vmem>>, vector<1x56x384xf32>,
    return
  }
  func.func @transform_0(%arg0: i32) -> (i32, i32, i32) {
    %c0_i32 = arith.constant 0 : i32
    %c0_i32_0 = arith.constant 0 : i32
    %c0_i32_1 = arith.constant 0 : i32
    return %arg0, %c0_i32, %c0_i32_0 : i32, i32, i32
  }
  func.func @transform_1(%arg0: i32) -> (i32, i32) {
    %c0_i32 = arith.constant 0 : i32
    %c0_i32_0 = arith.constant 0 : i32
    %c0_i32_1 = arith.constant 0 : i32
    return %c0_i32, %c0_i32_0 : i32, i32
  }
  func.func @transform_2(%arg0: i32) -> (i32, i32) {
    %c0_i32 = arith.constant 0 : i32
    %c0_i32_0 = arith.constant 0 : i32
    %c0_i32_1 = arith.constant 0 : i32
    return %c0_i32, %c0_i32_0 : i32, i32
  }
  func.func @transform_3(%arg0: i32) -> (i32, i32) {
    %c0_i32 = arith.constant 0 : i32
    %c0_i32_0 = arith.constant 0 : i32
    %c0_i32_1 = arith.constant 0 : i32
    return %c0_i32, %c0_i32_0 : i32, i32
  }
  func.func @transform_4(%arg0: i32) -> (i32, i32) {
    %c0_i32 = arith.constant 0 : i32
    %c0_i32_0 = arith.constant 0 : i32
    %c0_i32_1 = arith.constant 0 : i32
    return %c0_i32, %c0_i32_0 : i32, i32
  }
  func.func @transform_5(%arg0: i32) -> (i32, i32, i32) {
    %c0_i32 = arith.constant 0 : i32
    %c0_i32_0 = arith.constant 0 : i32
    %c0_i32_1 = arith.constant 0 : i32
    return %arg0, %c0_i32, %c0_i32_0 : i32, i32, i32
  }
}

</mosaic_0001>

<bundles_post_ra>
// kernel: tpu_custom_call.1
= control target key start
LH: loop header
LB: loop body
LE: loop exit
PB: predicated region body
PF: predicated region fallthrough
CT: control target
= control target key end

     0   :  { %10 = vsyncpa [#allocation3], 0  ;;  %s1423_s0 = inlined_call_operand.vmem [shape: bf16[4,16,512], index: 0, kind: input, shape index: {}]   ;;  %s1424_s1 = inlined_call_operand.hbm [shape: bf16[32,144], index: 1, kind: input, shape index: {}]   ;;  %s1425_s2 = inlined_call_operand.vmem [shape: f32[32,1], index: 2, kind: input, shape index: {}]   ;;  %s1426_s3 = inlined_call_operand.vmem [shape: bf16[56,32], index: 3, kind: input, shape index: {}]   ;;  %s1427_s4 = inlined_call_operand.vmem [shape: f32[56,1], index: 4, kind: input, shape index: {}]   ;;  %s1428_s5 = inlined_call_operand.hbm [shape: f32[4,56,384], index: 5, kind: output, shape index: {}]  }
   0x1   :  { %11 = vsyncpa [#allocation4], 0 }
   0x2   :  { %13 = vsyncpa [#allocation4 + $0x1], 0  ;;  %s1161_s18 = smov 0   ;;  %s1163_s19 = smov 0  }
   0x3   :  { %s1165_s20 = smov 0   ;;  %s1167_s21 = smov 0  }
   0x4 LB: > { %s1182_s22 = sadd.s32 4294967295, %s1114_s21   ;;  %s879_s23 = sadd.s32 4294967294, %s1114_s21   ;;  %s1114_s21 = sphi %s1167_s21, %s1444_s21   ;;  %s1110_s20 = sphi %s1165_s20, %s1443_s20   ;;  %s1106_s19 = sphi %s1163_s19, %s1442_s19   ;;  %s1102_s18 = sphi %s1161_s18, %s1441_s18  }
   0x5   : > { %s1186_s24 = sadd.s32 1, %s1114_s21   ;;  %s136_s25 = sadd.s32 1, %s1110_s20 }
   0x6   : > { %s133_s26 = ssub.s32 %s1114_s21, %s1186_s24  ;;  %p146_p0 = scmp.ne.s32.totalorder %s1110_s20, %s1106_s19 }
   0x7   : > { %p134_p1 = scmp.eq.s32.totalorder %s133_s26, 0  ;;  %p147_p2 = scmp.eq.s32.totalorder %s1182_s22, 3 }
   0x8   : > { %p152_p3 = scmp.ne.s32.totalorder %s1106_s19, %s1102_s18  ;;  %p153_p4 = scmp.eq.s32.totalorder %s879_s23, 3 }
   0x9   : > { %s1197_s27 = scalar_select %p134_p1, %s1110_s20, %s136_s25  }
   0xa   : > { %p1199_p5 = por %p147_p2, %p146_p0  ;;  %p1203_p6 = por %p153_p4, %p152_p3 }
   0xb   : > { %p880_p7 = scmp.ge.s32.totalorder %s1114_s21, 1  ;;  %p160_p8 = scmp.lt.s32.totalorder %s1114_s21, 5 }
   0xc   : > { %s1432_s28 = scalar_select %p1199_p5, 1, 0 }
   0xd   : > { %s1433_s29 = scalar_select %p1203_p6, 1, 0 }
   0xe   : > { %p1429_p9 = scmp.eq.s32.totalorder %s1182_s22, 0  ;;  %p1210_p10 = pnand %p880_p7, %p160_p8 }
   0xf   : > { %s1116_s6 = smov [#allocation2]   ;;  %s1020_s11 = scalar_lea.hbm %s1424_s1, 512 }
  0x10   : > { %s1434_s30 = scalar_select %p1210_p10, 1, 0 }
  0x11   : > { %s172_s7 = sshll.u32 %s1116_s6, 4  ;;  %p945_p11 = pneg %p1210_p10  ;;  %s173_s7 = int_to_ptr.vmem [resolvable:$true] %s172_s7 }
  0x12   : > { %p1021_p13 = scmp.ne.s32.totalorder %s1424_s1, %s1020_s11  ;;  %p1027_p3 = scmp.lt.u32.totalorder %s1020_s11, %s1424_s1 }
  0x13   : > { %p1218_p12 = pnand %p1429_p9, %p945_p11 }
  0x15   : > { %p1022_p0 = pneg %p1218_p12 }
  0x17   : > { %p1023_p1 = pnand %p1022_p0, %p1021_p13 }
  0x19   : > { %p1024_p2 = pneg %p1023_p1 }
  0x1b   : > { %p1029_p4 = pnand %p1027_p3, %p1024_p2 }
  0x1d   : > { %1032 = shalt.err (!%p1029_p4)
}
  0x1e   : > { %s1033_s16 = scalar_lea.vmem %s173_s7, 512  ;;  %p1041_p9 = scmp.lt.s32.totalorder %s173_s7, %s173_s7 }
  0x1f   : > { %p1034_p7 = scmp.ne.s32.totalorder %s173_s7, %s1033_s16  ;;  %p1042_p6 = scmp.lt.s32.totalorder %s1033_s16, %s1033_s16 }
  0x21   : > { %p1036_p8 = pnand %p1034_p7, %p1022_p0  ;;  %p1043_p5 = por %p1042_p6, %p1041_p9 }
  0x23   : > { %p1037_p11 = pneg %p1036_p8 }
  0x25   : > { %p1044_p10 = pnand %p1043_p5, %p1037_p11 }
  0x27   : > { %1047 = shalt.err (!%p1044_p10)
}
  0x28   : > { %s1117_s17 = smov 128   ;;  %s1118_s23 = smov 8  }
  0x29   : > { %948 = dma.hbm_to_vmem [thread:$0]  (!%p1218_p12), %s1424_s1, 512, %s173_s7, [#allocation3], %s1117_s17, %s1117_s17, %s1118_s23  }
  0x2a   : > { %p1436_p13 = scmp.ne.s32.totalorder %s1434_s30, 0 }
  0x2b   : > { %p1437_p1 = scmp.eq.s32.totalorder (!%p1436_p13), %s1182_s22, 0 }
  0x2c   : > { %205 = sbr.rel (%p1436_p13) target bundleno = 715 (0x2cb), region = 40 }
  0x33   : > { %1093 = dma.done.wait (%p1437_p1), [#allocation3], 512   ;;  %p1438_p0 = pmov %p1437_p1 }
  0x34   : > { %p233_p5 = scmp.lt.s32.totalorder %s1182_s22, 3  ;;  %s1119_s7 = smov 127   ;;  %v1120_v3 = vmov 0   ;;  %v1012_v5 = vld [vmem:[#allocation2 + $0x4] ss:$8 sps:$4 sm:$0xff]   ;;  %vm428_vm0 = vcmask 130048  }
  0x35   : > { %1095 = vsyncadd (%p1438_p0), [#allocation3], 4294966784  ;;  %488 = vmatprep.subr.bf16.mxu1 %v1120_v3  ;;  %1003 = vset.pattern.permute.xlu1 %v1120_v3  ;;  %s1121_s30 = smov 126   ;;  %s1122_s12 = smov 110   ;;  %v387_v6 = vld [vmem:[%s1425_s2 + $0x8] sm:$0xff]  ;;  %v386_v7 = vld [vmem:[%s1425_s2] sm:$0xff] }
  0x36   : > { %s234_s6 = scalar_select %p233_p5, %s1182_s22, 3  ;;  %1002 = vset.pattern.permute.xlu0 %v1120_v3  ;;  %895 = vmatprep.mubr.msk.bf16.mxu0 %vm428_vm0, %v1012_v5  ;;  %v388_v8 = vld [vmem:[%s1425_s2 + $0x10] sm:$0xff]  ;;  %v389_v9 = vld [vmem:[%s1425_s2 + $0x18] sm:$0xff]  ;;  %v562_v10 = vld [vmem:[%s1427_s4] sm:$0xff]  ;;  %vm270_vm1 = vcmask 1039360   ;;  %vm285_vm2 = vcmask 1031168  }
  0x37   : > { %s1123_s13 = smov 109   ;;  %s1124_s14 = smov 108   ;;  %897 = vmatprep.mubr.msk.bf16.mxu1 %vm428_vm0, %v1012_v5  ;;  %v563_v11 = vld [vmem:[%s1427_s4 + $0x8] sm:$0xff]  ;;  %v564_v12 = vld [vmem:[%s1427_s4 + $0x10] sm:$0xff]  ;;  %v565_v13 = vld [vmem:[%s1427_s4 + $0x18] sm:$0xff]  ;;  %vm300_vm3 = vcmask 900096  }
  0x38   : > { %s914_s9 = sshll.u32 %s234_s6, 5  ;;  %s1125_s15 = smov 92   ;;  %v566_v14 = vld [vmem:[%s1427_s4 + $0x20] sm:$0xff]  ;;  %v567_v15 = vld [vmem:[%s1427_s4 + $0x28] sm:$0xff]  ;;  %v568_v16 = vld [vmem:[%s1427_s4 + $0x30] sm:$0xff]  ;;  %vm315_vm4 = vcmask 891904  }
  0x39   : > { %s237_s11 = scalar_lea.vmem %s1423_s0, %s914_s9  ;;  %s1126_s16 = smov 91   ;;  %vm330_vm5 = vcmask 883712   ;;  %vm345_vm6 = vcmask 752640   ;;  %vm360_vm7 = vcmask 744448   ;;  %vm375_vm8 = vcmask 736256  }
  0x3a   : > { %v1004_v0 = vld [vmem:[%s237_s11 + $0x4] ss:$16 sps:$4 sm:$0xff]   ;;  %v1006_v1 = vld [vmem:[%s237_s11] ss:$16 sps:$4 sm:$0xff]   ;;  %v1007_v2 = vld [vmem:[%s237_s11 + $0x8] ss:$16 sps:$4 sm:$0xff]  }
  0x3b   : > { %264 = vrot.lane.b32.xlu0 %v1004_v0, %s1119_s7  ;;  %435 = vmatprep.subr.bf16.mxu0 %v1004_v0  ;;  %v1009_v4 = vld [vmem:[%s237_s11 + $0xc] ss:$16 sps:$4 sm:$0xff]   ;;  %s1127_s17 = smov 90   ;;  %v1010_v5 = vld [vmem:[#allocation2] ss:$8 sps:$4 sm:$0xff]   ;;  %vm622_vm9 = vcmask 261120  }
  0x3c   : > { %262 = vrot.lane.b32.xlu1 %v1006_v1, %s1119_s7  ;;  %436 = vmatpush1.bf16.msra.mxu0 %v1006_v1  ;;  %s938_s25 = smul.u32 2688, %s1182_s22  ;;  %p1439_p9 = scmp.ne.s32.totalorder %s1432_s28, 0 }
  0x3d   : > { %489 = vmatpush1.bf16.msra.mxu1 %v1007_v2  ;;  %s1128_s11 = smov [#allocation5]  }
  0x3e   : > { %490 = vmatprep.subr.bf16.mxu1 %v1120_v3  ;;  %s1371_s9 = scalar_lea.hbm %s1428_s5, %s938_s25 }
  0x3f   : > { %266 = vrot.lane.b32.xlu0 %v1007_v2, %s1119_s7 }
  0x40   : > { %279 = vrot.lane.b32.xlu1 %v1004_v0, %s1121_s30 }
  0x43   : > { %281 = vrot.lane.b32.xlu0 %v1007_v2, %s1121_s30 }
  0x44   : > { %277 = vrot.lane.b32.xlu1 %v1006_v1, %s1121_s30 }
  0x47   : > { %294 = vrot.lane.b32.xlu0 %v1004_v0, %s1122_s12 }
  0x48   : > { %296 = vrot.lane.b32.xlu1 %v1007_v2, %s1122_s12 }
  0x4b   : > { %292 = vrot.lane.b32.xlu0 %v1006_v1, %s1122_s12 }
  0x4c   : > { %268 = vrot.lane.b32.xlu1 %v1009_v4, %s1119_s7  ;;  %s1052_s7 = sshll.u32 %s1128_s11, 4  ;;  %s1053_s7 = int_to_ptr.vmem [resolvable:$false] %s1052_s7 }
  0x4f   : > { %309 = vrot.lane.b32.xlu0 %v1004_v0, %s1123_s13 }
  0x50   : > { %311 = vrot.lane.b32.xlu1 %v1007_v2, %s1123_s13 }
  0x53   : > { %307 = vrot.lane.b32.xlu0 %v1006_v1, %s1123_s13 }
  0x54   : > { %283 = vrot.lane.b32.xlu1 %v1009_v4, %s1121_s30  ;;  %s1054_s30 = scalar_lea.vmem %s1053_s7, 5376 }
  0x57   : > { %324 = vrot.lane.b32.xlu0 %v1004_v0, %s1124_s14 }
  0x58   : > { %326 = vrot.lane.b32.xlu1 %v1007_v2, %s1124_s14 }
  0x5b   : > { %322 = vrot.lane.b32.xlu0 %v1006_v1, %s1124_s14 }
  0x5c   : > { %298 = vrot.lane.b32.xlu1 %v1009_v4, %s1122_s12 }
  0x5f   : > { %339 = vrot.lane.b32.xlu0 %v1004_v0, %s1125_s15 }
  0x60   : > { %341 = vrot.lane.b32.xlu1 %v1007_v2, %s1125_s15 }
  0x63   : > { %337 = vrot.lane.b32.xlu0 %v1006_v1, %s1125_s15 }
  0x64   : > { %313 = vrot.lane.b32.xlu1 %v1009_v4, %s1123_s13 }
  0x67   : > { %354 = vrot.lane.b32.xlu0 %v1004_v0, %s1126_s16 }
  0x68   : > { %356 = vrot.lane.b32.xlu1 %v1007_v2, %s1126_s16 }
  0x6b   : > { %352 = vrot.lane.b32.xlu0 %v1006_v1, %s1126_s16 }
  0x6c   : > { %328 = vrot.lane.b32.xlu1 %v1009_v4, %s1124_s14 }
  0x6f   : > { %369 = vrot.lane.b32.xlu0 %v1004_v0, %s1127_s17 }
  0x70   : > { %371 = vrot.lane.b32.xlu1 %v1007_v2, %s1127_s17 }
  0x73   : > { %367 = vrot.lane.b32.xlu0 %v1006_v1, %s1127_s17 }
  0x74   : > { %343 = vrot.lane.b32.xlu1 %v1009_v4, %s1125_s15 }
  0x77   : > { %358 = vrot.lane.b32.xlu0 %v1009_v4, %s1126_s16  ;;  %s230_s16 = sand.u32 1, %s1106_s19  }
  0x78   : > { %373 = vrot.lane.b32.xlu1 %v1009_v4, %s1127_s17  ;;  %s937_s17 = smul.u32 168, %s230_s16  ;;  %s1382_s10 = scalar_lea.sflag [#allocation4], %s230_s16 }
  0x7a   : > { %s1348_s23 = scalar_lea.vmem [#allocation5], %s937_s17 }
  0x7b   : > { %392 = vperm.xlu0 %1002, %v386_v7   ;;  %v1013_v7 = vld [vmem:[#allocation2 + $0x14] ss:$8 sps:$4 sm:$0xff]   ;;  %s805_s26 = sshll.u32 %s1348_s23, 4  ;;  %s1375_s26 = int_to_ptr.vmem [resolvable:$true] %s805_s26 }
  0x7c   : > { %397 = vperm.xlu1 %1003, %v387_v6   ;;  %s1048_s8 = scalar_lea.vmem %s1375_s26, 2688  ;;  %p1055_p2 = scmp.lt.s32.totalorder %s1375_s26, %s1053_s7 }
  0x7d   : > { %p1049_p6 = scmp.ne.s32.totalorder %s1375_s26, %s1048_s8  ;;  %p1056_p3 = scmp.lt.s32.totalorder %s1054_s30, %s1048_s8 }
  0x7f   : > { %407 = vperm.xlu0 %1002, %v389_v9   ;;  %p1050_p10 = pnand %p1049_p6, %p1439_p9  ;;  %p1057_p4 = por %p1056_p3, %p1055_p2 }
  0x80   : > { %402 = vperm.xlu1 %1003, %v388_v8  }
  0x81   : > { %p1051_p12 = pneg %p1050_p10 }
  0x83   : > { %576 = vperm.xlu0 %1002, %v563_v11   ;;  %v1015_v11 = vld [vmem:[#allocation2 + $0x10] ss:$8 sps:$4 sm:$0xff]   ;;  %p1058_p7 = pnand %p1057_p4, %p1051_p12 }
  0x84   : > { %571 = vperm.xlu1 %1003, %v562_v10  }
  0x87   : > { %586 = vperm.xlu0 %1002, %v565_v13  }
  0x88   : > { %581 = vperm.xlu1 %1003, %v564_v12  }
  0x8b   : > { %596 = vperm.xlu0 %1002, %v567_v15  }
  0x8c   : > { %591 = vperm.xlu1 %1003, %v566_v14  }
  0x90   : > { %601 = vperm.xlu1 %1003, %v568_v16  }
  0xad   : > { %v265_v17 = vpop.permute.xlu0 %264 }
  0xae   : > { %v263_v18 = vpop.permute.xlu1 %262 }
  0xaf   : > { %v271_v22 = vsel %vm270_vm1, %v263_v18, %v265_v17 }
  0xb1   : > { %v267_v19 = vpop.permute.xlu0 %266 }
  0xb2   : > { %v280_v20 = vpop.permute.xlu1 %279  ;;  %v272_v21 = vsel %vm270_vm1, %v265_v17, %v267_v19 }
  0xb3   : > { %437 = vmatprep.subr.bf16.mxu0 %v272_v21 }
  0xb4   : > { %438 = vmatpush1.bf16.msra.mxu0 %v271_v22 }
  0xb5   : > { %v282_v23 = vpop.permute.xlu0 %281 }
  0xb6   : > { %v278_v24 = vpop.permute.xlu1 %277  ;;  %v287_v25 = vsel %vm285_vm2, %v280_v20, %v282_v23 }
  0xb7   : > { %439 = vmatprep.subr.bf16.mxu0 %v287_v25  ;;  %v286_v26 = vsel %vm285_vm2, %v278_v24, %v280_v20 }
  0xb8   : > { %440 = vmatpush1.bf16.msra.mxu0 %v286_v26 }
  0xb9   : > { %v295_v27 = vpop.permute.xlu0 %294 }
  0xba   : > { %v297_v28 = vpop.permute.xlu1 %296 }
  0xbb   : > { %v302_v29 = vsel %vm300_vm3, %v295_v27, %v297_v28 }
  0xbc   : > { %441 = vmatprep.subr.bf16.mxu0 %v302_v29 }
  0xbd   : > { %v293_v30 = vpop.permute.xlu0 %292 }
  0xbe   : > { %v269_v31 = vpop.permute.xlu1 %268  ;;  %v301_v32 = vsel %vm300_vm3, %v293_v30, %v295_v27 }
  0xbf   : > { %442 = vmatpush1.bf16.msra.mxu0 %v301_v32  ;;  %v273_v33 = vsel %vm270_vm1, %v267_v19, %v269_v31 }
  0xc0   : > { %491 = vmatpush1.bf16.msra.mxu1 %v273_v33 }
  0xc1   : > { %v310_v34 = vpop.permute.xlu0 %309  ;;  %492 = vmatprep.subr.bf16.mxu1 %v1120_v3 }
  0xc2   : > { %v312_v35 = vpop.permute.xlu1 %311 }
  0xc3   : > { %v317_v36 = vsel %vm315_vm4, %v310_v34, %v312_v35 }
  0xc4   : > { %443 = vmatprep.subr.bf16.mxu0 %v317_v36 }
  0xc5   : > { %v308_v37 = vpop.permute.xlu0 %307 }
  0xc6   : > { %v284_v38 = vpop.permute.xlu1 %283  ;;  %v316_v39 = vsel %vm315_vm4, %v308_v37, %v310_v34 }
  0xc7   : > { %444 = vmatpush1.bf16.msra.mxu0 %v316_v39  ;;  %v288_v40 = vsel %vm285_vm2, %v282_v23, %v284_v38 }
  0xc8   : > { %493 = vmatpush1.bf16.msra.mxu1 %v288_v40 }
  0xc9   : > { %v325_v41 = vpop.permute.xlu0 %324  ;;  %494 = vmatprep.subr.bf16.mxu1 %v1120_v3 }
  0xca   : > { %v327_v42 = vpop.permute.xlu1 %326 }
  0xcb   : > { %v332_v43 = vsel %vm330_vm5, %v325_v41, %v327_v42 }
  0xcc   : > { %445 = vmatprep.subr.bf16.mxu0 %v332_v43 }
  0xcd   : > { %v323_v44 = vpop.permute.xlu0 %322 }
  0xce   : > { %v299_v45 = vpop.permute.xlu1 %298  ;;  %v331_v46 = vsel %vm330_vm5, %v323_v44, %v325_v41 }
  0xcf   : > { %446 = vmatpush1.bf16.msra.mxu0 %v331_v46  ;;  %v303_v47 = vsel %vm300_vm3, %v297_v28, %v299_v45 }
  0xd0   : > { %495 = vmatpush1.bf16.msra.mxu1 %v303_v47 }
  0xd1   : > { %v340_v48 = vpop.permute.xlu0 %339  ;;  %496 = vmatprep.subr.bf16.mxu1 %v1120_v3 }
  0xd2   : > { %v342_v49 = vpop.permute.xlu1 %341 }
  0xd3   : > { %v347_v50 = vsel %vm345_vm6, %v340_v48, %v342_v49 }
  0xd4   : > { %447 = vmatprep.subr.bf16.mxu0 %v347_v50 }
  0xd5   : > { %v338_v51 = vpop.permute.xlu0 %337 }
  0xd6   : > { %v314_v52 = vpop.permute.xlu1 %313  ;;  %v346_v53 = vsel %vm345_vm6, %v338_v51, %v340_v48 }
  0xd7   : > { %448 = vmatpush1.bf16.msra.mxu0 %v346_v53  ;;  %v318_v54 = vsel %vm315_vm4, %v312_v35, %v314_v52 }
  0xd8   : > { %497 = vmatpush1.bf16.msra.mxu1 %v318_v54 }
  0xd9   : > { %v355_v55 = vpop.permute.xlu0 %354  ;;  %498 = vmatprep.subr.bf16.mxu1 %v1120_v3 }
  0xda   : > { %v357_v56 = vpop.permute.xlu1 %356 }
  0xdb   : > { %v362_v57 = vsel %vm360_vm7, %v355_v55, %v357_v56 }
  0xdc   : > { %449 = vmatprep.subr.bf16.mxu0 %v362_v57  ;;  %v1016_v57 = vld [vmem:[%s1426_s3] sm:$0xff]  }
  0xdd   : > { %v353_v58 = vpop.permute.xlu0 %352 }
  0xde   : > { %v329_v59 = vpop.permute.xlu1 %328  ;;  %v361_v60 = vsel %vm360_vm7, %v353_v58, %v355_v55  ;;  %v1017_v58 = vld [vmem:[%s1426_s3 + $0x18] ss:$0 sps:$4 sm:$0xff]  }
  0xdf   : > { %450 = vmatpush1.bf16.msra.mxu0 %v361_v60  ;;  %v333_v61 = vsel %vm330_vm5, %v327_v42, %v329_v59 }
  0xe0   : > { %499 = vmatpush1.bf16.msra.mxu1 %v333_v61 }
  0xe1   : > { %v370_v62 = vpop.permute.xlu0 %369  ;;  %500 = vmatprep.subr.bf16.mxu1 %v1120_v3 }
  0xe2   : > { %v372_v63 = vpop.permute.xlu1 %371 }
  0xe3   : > { %v377_v0 = vsel %vm375_vm8, %v370_v62, %v372_v63 }
  0xe4   : > { %451 = vmatprep.subr.bf16.mxu0 %v377_v0 }
  0xe5   : > { %v368_v1 = vpop.permute.xlu0 %367 }
  0xe6   : > { %v344_v2 = vpop.permute.xlu1 %343  ;;  %v376_v4 = vsel %vm375_vm8, %v368_v1, %v370_v62  ;;  %v1018_v1 = vld [vmem:[%s1426_s3 + $0x8] sm:$0xff]  }
  0xe7   : > { %452 = vmatpush1.bf16.msra.mxu0 %v376_v4  ;;  %v348_v6 = vsel %vm345_vm6, %v342_v49, %v344_v2  ;;  %v1019_v2 = vld [vmem:[%s1426_s3 + $0x10] sm:$0xff]  }
  0xe8   : > { %501 = vmatpush1.bf16.msra.mxu1 %v348_v6 }
  0xe9   : > { %v359_v8 = vpop.permute.xlu0 %358  ;;  %502 = vmatprep.subr.bf16.mxu1 %v1120_v3 }
  0xea   : > { %468 = vmatmul.mubr.bf16.vlgmr.msra.gmra.mrb[0].mxu0 %v1010_v5  ;;  %v363_v9 = vsel %vm360_vm7, %v357_v56, %v359_v8  ;;  %v374_v10 = vpop.permute.xlu1 %373 }
  0xeb   : > { %896 = vmatprep.mubr.msk.bf16.mxu0 %vm428_vm0, %v1013_v7  ;;  %v378_v12 = vsel %vm375_vm8, %v372_v63, %v374_v10 }
  0xec   : > { %503 = vmatpush1.bf16.msra.mxu1 %v363_v9 }
  0xed   : > { %504 = vmatprep.subr.bf16.mxu1 %v1120_v3 }
  0xf0   : > { %505 = vmatpush1.bf16.msra.mxu1 %v378_v12 }
  0xf2   : > { %478 = vmatmul.mubr.bf16.gmra.mrb[4].mxu0 %v1015_v11 }
  0xf3   : > { %521 = vmatmul.mubr.bf16.vlgmr.msra.gmra.mrb[0].mxu1 %v1010_v5  ;;  %667 = vmatprep.mubr.bf16.mxu0 %v1120_v3 }
  0xf4   : > { %898 = vmatprep.mubr.msk.bf16.mxu1 %vm428_vm0, %v1013_v7 }
  0xfa   : > { %v393_v13 = vpop.permute.xlu0 %392 }
  0xfb   : > { %529 = vmatmul.mubr.bf16.gmra.mrb[4].mxu1 %v1015_v11  ;;  %v398_v15 = vpop.permute.xlu1 %397 }
  0xfc   : > { %697 = vmatprep.mubr.bf16.mxu1 %v1120_v3 }
  0xfe   : > { %v408_v29 = vpop.permute.xlu0 %407 }
  0xff   : > { %v403_v27 = vpop.permute.xlu1 %402 }
 0x102   : > { %v577_v7 = vpop.permute.xlu0 %576 }
 0x103   : > { %v572_v4 = vpop.permute.xlu1 %571 }
 0x107   : > { %v582_v5 = vpop.permute.xlu1 %581 }
 0x10b   : > { %v592_v6 = vpop.permute.xlu1 %591 }
 0x10f   : > { %v602_v8 = vpop.permute.xlu1 %601 }
 0x1bd   : > { %v469_v14 = vpop.f32.mrb[0].mxu0 }
 0x1be   : > { %v470_v16 = vadd.f32 %v469_v14, %v393_v13  ;;  %v471_v17 = vpop.f32.mrb[1].mxu0 }
 0x1bf   : > { %v472_v18 = vadd.f32 %v471_v17, %v393_v13  ;;  %v473_v19 = vpop.f32.mrb[2].mxu0 }
 0x1c0   : > { %v474_v20 = vadd.f32 %v473_v19, %v398_v15  ;;  %v475_v21 = vpop.f32.mrb[3].mxu0  ;;  %v537_v23 = vmax.f32 %v470_v16, 0.0 }
 0x1c1   : > { %v476_v22 = vadd.f32 %v475_v21, %v398_v15  ;;  %v538_v25 = vmax.f32 %v472_v18, 0.0 }
 0x1c2   : > { %v540_v24 = vmax.f32 %v474_v20, 0.0 }
 0x1c3   : > { %v541_v26 = vmax.f32 %v476_v22, 0.0  ;;  %v587_v22 = vpop.permute.xlu0 %586 }
 0x1c4   : > { %v556_v28 = vpack.c.bf16 %v540_v24, %v537_v23 }
 0x1c5   : > { %v557_v30 = vpack.c.bf16 %v541_v26, %v538_v25  ;;  %v479_v31 = vpop.f32.mrb[4].mxu0 }
 0x1c6   : > { %v480_v32 = vadd.f32 %v479_v31, %v403_v27  ;;  %v522_v33 = vpop.f32.mrb[0].mxu1  ;;  %v481_v34 = vpop.f32.mrb[5].mxu0 }
 0x1c7   : > { %v523_v35 = vadd.f32 %v522_v33, %v393_v13  ;;  %v482_v36 = vadd.f32 %v481_v34, %v403_v27  ;;  %v524_v37 = vpop.f32.mrb[1].mxu1  ;;  %v483_v38 = vpop.f32.mrb[6].mxu0  ;;  %635 = vmatprep.subr.bf16.mxu0 %v557_v30  ;;  %933 = vmatprep.subr.bf16.mxu1 %v557_v30 }
 0x1c8   : > { %v484_v39 = vadd.f32 %v483_v38, %v408_v29  ;;  %v525_v40 = vpop.f32.mrb[2].mxu1  ;;  %v485_v41 = vpop.f32.mrb[7].mxu0  ;;  %636 = vmatpush1.bf16.msra.mxu0 %v556_v28  ;;  %935 = vmatpush1.bf16.msra.mxu1 %v556_v28  ;;  %v543_v45 = vmax.f32 %v480_v32, 0.0 }
 0x1c9   : > { %v526_v42 = vadd.f32 %v525_v40, %v398_v15  ;;  %v486_v43 = vadd.f32 %v485_v41, %v408_v29  ;;  %v527_v44 = vpop.f32.mrb[3].mxu1  ;;  %v539_v47 = vmax.f32 %v523_v35, 0.0  ;;  %v544_v48 = vmax.f32 %v482_v36, 0.0 }
 0x1ca   : > { %v546_v46 = vmax.f32 %v484_v39, 0.0  ;;  %v597_v39 = vpop.permute.xlu0 %596 }
 0x1cb   : > { %v542_v49 = vmax.f32 %v526_v42, 0.0  ;;  %v547_v50 = vmax.f32 %v486_v43, 0.0 }
 0x1cc   : > { %v559_v51 = vpack.c.bf16 %v546_v46, %v543_v45 }
 0x1cd   : > { %v558_v52 = vpack.c.bf16 %v542_v49, %v539_v47  ;;  %v560_v53 = vpack.c.bf16 %v547_v50, %v544_v48 }
 0x1ce   : > { %v530_v54 = vpop.f32.mrb[4].mxu1 }
 0x1cf   : > { %v531_v55 = vadd.f32 %v530_v54, %v403_v27  ;;  %v532_v56 = vpop.f32.mrb[5].mxu1  ;;  %637 = vmatprep.subr.bf16.mxu0 %v560_v53  ;;  %934 = vmatprep.subr.bf16.mxu1 %v560_v53 }
 0x1d0   : > { %v533_v59 = vpop.f32.mrb[6].mxu1  ;;  %638 = vmatpush1.bf16.msra.mxu0 %v559_v51  ;;  %936 = vmatpush1.bf16.msra.mxu1 %v559_v51 }
 0x1d1   : > { %v534_v60 = vadd.f32 %v533_v59, %v408_v29  ;;  %921 = vmatprep.subr.bf16.mxu1 %v558_v52  ;;  %v535_v61 = vpop.f32.mrb[7].mxu1  ;;  %v545_v62 = vmax.f32 %v531_v55, 0.0 }
 0x1d3   : > { %v548_v63 = vmax.f32 %v534_v60, 0.0  ;;  %903 = vmatmul.mubr.msk.bf16.vlgmr.msra.gmra.mrb[8].mxu0 %vm622_vm9, %v1016_v57  ;;  %906 = vmatmul.mubr.msk.bf16.vlgmr.msra.gmra.mrb[8].mxu1 %vm622_vm9, %v1017_v58 }
 0x1d4   : > { %922 = vmatpush3.bf16.msra.mxu1 %v558_v52  ;;  %677 = vmatprep.mubr.bf16.mxu0 %v1120_v3 }
 0x1d5   : > { %v561_v0 = vpack.c.bf16 %v548_v63, %v545_v62  ;;  %925 = vmatprep.mubr.msk.bf16.mxu1 %vm622_vm9, %v1016_v57 }
 0x1d7   : > { %923 = vmatprep.subr.bf16.mxu1 %v561_v0 }
 0x1d8   : > { %924 = vmatpush3.bf16.msra.mxu1 %v561_v0 }
 0x1db   : > { %904 = vmatmul.mubr.msk.bf16.gmra.mrb[12].mxu0 %vm622_vm9, %v1018_v1  ;;  %926 = vmatmul.mubr.msk.bf16.vlgmr.msra.gmra.mrb[12].mxu1 %vm622_vm9, %v1018_v1 }
 0x1dc   : > { %687 = vmatprep.mubr.bf16.mxu0 %v1120_v3  ;;  %929 = vmatprep.mubr.msk.bf16.mxu1 %vm622_vm9, %v1019_v2 }
 0x1e3   : > { %905 = vmatmul.mubr.msk.bf16.gmra.mrb[16].mxu0 %vm622_vm9, %v1019_v2  ;;  %930 = vmatmul.mubr.msk.bf16.gmra.mrb[16].mxu1 %vm622_vm9, %v1017_v58 }
 0x2a6   : > { %v669_v9 = vpop.f32.mrb[8].mxu0  ;;  %v699_v10 = vpop.f32.mrb[8].mxu1 }
 0x2a7   : > { %v670_v11 = vadd.f32 %v669_v9, %v572_v4  ;;  %v700_v12 = vadd.f32 %v699_v10, %v602_v8  ;;  %v671_v13 = vpop.f32.mrb[9].mxu0  ;;  %v701_v3 = vpop.f32.mrb[9].mxu1 }
 0x2a8   : > { %v672_v14 = vadd.f32 %v671_v13, %v572_v4  ;;  %v702_v15 = vadd.f32 %v701_v3, %v602_v8  ;;  %v673_v16 = vpop.f32.mrb[10].mxu0  ;;  %v703_v17 = vpop.f32.mrb[10].mxu1 }
 0x2a9   : > { %770 = vst [vmem:[%s1348_s23] sm:$0xff] %v670_v11  ;;  %788 = vst [vmem:[%s1348_s23 + $0x90] sm:$0xff] %v700_v12  ;;  %v674_v18 = vadd.f32 %v673_v16, %v577_v7  ;;  %v675_v19 = vpop.f32.mrb[11].mxu0  ;;  %v704_v20 = vpop.f32.mrb[11].mxu1 }
 0x2aa   : > { %771 = vst [vmem:[%s1348_s23 + $0x8] sm:$0xff] %v672_v14  ;;  %789 = vst [vmem:[%s1348_s23 + $0x98] sm:$0xff] %v702_v15  ;;  %v676_v21 = vadd.f32 %v675_v19, %v577_v7 }
 0x2ab   : > { %773 = vst [vmem:[%s1348_s23 + $0x18] sm:$0xff] %v674_v18 }
 0x2ac   : > { %774 = vst [vmem:[%s1348_s23 + $0x20] sm:$0xff] %v676_v21 }
 0x2ae   : > { %v679_v23 = vpop.f32.mrb[12].mxu0  ;;  %v927_v24 = vpop.f32.mrb[12].mxu1 }
 0x2af   : > { %v680_v25 = vadd.f32 %v679_v23, %v582_v5  ;;  %v749_v26 = vadd.f32 %v927_v24, %v582_v5  ;;  %v681_v27 = vpop.f32.mrb[13].mxu0  ;;  %v740_v28 = vpop.f32.mrb[13].mxu1 }
 0x2b0   : > { %v682_v29 = vadd.f32 %v681_v27, %v582_v5  ;;  %v741_v30 = vadd.f32 %v740_v28, %v572_v4  ;;  %v683_v31 = vpop.f32.mrb[14].mxu0  ;;  %v928_v32 = vpop.f32.mrb[14].mxu1 }
 0x2b1   : > { %776 = vst [vmem:[%s1348_s23 + $0x30] sm:$0xff] %v680_v25  ;;  %778 = vst [vmem:[%s1348_s23 + $0x40] sm:$0xff] %v749_v26  ;;  %v684_v33 = vadd.f32 %v683_v31, %v587_v22  ;;  %v752_v34 = vadd.f32 %v928_v32, %v587_v22  ;;  %v685_v35 = vpop.f32.mrb[15].mxu0  ;;  %v743_v36 = vpop.f32.mrb[15].mxu1 }
 0x2b2   : > { %777 = vst [vmem:[%s1348_s23 + $0x38] sm:$0xff] %v682_v29  ;;  %772 = vst [vmem:[%s1348_s23 + $0x10] sm:$0xff] %v741_v30  ;;  %v686_v37 = vadd.f32 %v685_v35, %v587_v22  ;;  %v744_v38 = vadd.f32 %v743_v36, %v577_v7 }
 0x2b3   : > { %779 = vst [vmem:[%s1348_s23 + $0x48] sm:$0xff] %v684_v33  ;;  %781 = vst [vmem:[%s1348_s23 + $0x58] sm:$0xff] %v752_v34 }
 0x2b4   : > { %780 = vst [vmem:[%s1348_s23 + $0x50] sm:$0xff] %v686_v37  ;;  %775 = vst [vmem:[%s1348_s23 + $0x28] sm:$0xff] %v744_v38 }
 0x2b6   : > { %v689_v40 = vpop.f32.mrb[16].mxu0  ;;  %v931_v41 = vpop.f32.mrb[16].mxu1 }
 0x2b7   : > { %v690_v42 = vadd.f32 %v689_v40, %v592_v6  ;;  %v765_v43 = vadd.f32 %v931_v41, %v602_v8  ;;  %v691_v44 = vpop.f32.mrb[17].mxu0  ;;  %v756_v45 = vpop.f32.mrb[17].mxu1 }
 0x2b8   : > { %v692_v46 = vadd.f32 %v691_v44, %v592_v6  ;;  %v757_v47 = vadd.f32 %v756_v45, %v592_v6  ;;  %v693_v48 = vpop.f32.mrb[18].mxu0  ;;  %v932_v49 = vpop.f32.mrb[18].mxu1 }
 0x2b9   : > { %782 = vst [vmem:[%s1348_s23 + $0x60] sm:$0xff] %v690_v42  ;;  %790 = vst [vmem:[%s1348_s23 + $0xa0] sm:$0xff] %v765_v43  ;;  %v694_v50 = vadd.f32 %v693_v48, %v597_v39  ;;  %v695_v51 = vpop.f32.mrb[19].mxu0  ;;  %v759_v52 = vpop.f32.mrb[19].mxu1 }
 0x2ba   : > { %783 = vst [vmem:[%s1348_s23 + $0x68] sm:$0xff] %v692_v46  ;;  %784 = vst [vmem:[%s1348_s23 + $0x70] sm:$0xff] %v757_v47  ;;  %v696_v53 = vadd.f32 %v695_v51, %v597_v39  ;;  %v760_v54 = vadd.f32 %v759_v52, %v597_v39 }
 0x2bb   : > { %785 = vst [vmem:[%s1348_s23 + $0x78] sm:$0xff] %v694_v50 }
 0x2bc   : > { %786 = vst [vmem:[%s1348_s23 + $0x80] sm:$0xff] %v696_v53  ;;  %787 = vst [vmem:[%s1348_s23 + $0x88] sm:$0xff] %v760_v54 }
 0x2bd   : > { %1061 = shalt.err (!%p1058_p7)
}
 0x2be   : > { %s1062_s12 = scalar_lea.hbm %s1371_s9, 2688  ;;  %s1066_s15 = scalar_lea.hbm %s1428_s5, 10752 }
 0x2bf   : > { %p1063_p8 = scmp.ne.s32.totalorder %s1371_s9, %s1062_s12  ;;  %p1067_p1 = scmp.lt.u32.totalorder %s1371_s9, %s1428_s5 }
 0x2c0   : > { %p1068_p0 = scmp.lt.u32.totalorder %s1066_s15, %s1062_s12  ;;  %p1070_p6 = scmp.lt.u32.totalorder %s1062_s12, %s1371_s9 }
 0x2c1   : > { %p1064_p11 = pnand %p1063_p8, %p1439_p9 }
 0x2c2   : > { %p1069_p5 = por %p1068_p0, %p1067_p1 }
 0x2c3   : > { %p1065_p13 = pneg %p1064_p11 }
 0x2c4   : > { %p1071_p10 = por %p1070_p6, %p1069_p5 }
 0x2c6   : > { %p1072_p12 = pnand %p1071_p10, %p1065_p13 }
 0x2c8   : > { %1075 = shalt.err (!%p1072_p12)
}
 0x2c9   : > { %s1129_s23 = smov 384   ;;  %s1130_s25 = smov 24  }
 0x2ca   : > { %943 = dma.vmem_to_hbm [thread:$0]  (%p1439_p9), %s1375_s26, 2688, %s1371_s9, %s1382_s10, %s1129_s23, %s1129_s23, %s1130_s25  }
 0x2cb PF: > { %p955_p2 = scmp.ge.s32.totalorder %s1114_s21, 2  ;;  %s820_s22 = sand.u32 1, %s1102_s18  }
 0x2cc   : > { %p1440_p3 = scmp.ne.s32.totalorder %s1433_s29, 0  ;;  %s821_s6 = scalar_lea.sflag [#allocation4], %s820_s22 }
 0x2ce   : > { %p950_p4 = pnand %p955_p2, %p1440_p3 }
 0x2d0   : > { %1097 = dma.done.wait (!%p950_p4), %s821_s6, 2688  }
 0x2d1   : > { %1099 = vsyncadd (!%p950_p4), %s821_s6, 4294964608  ;;  %p16_p7 = scmp.ge.s32.totalorder %s1186_s24, 6   ;;  %s1441_s18 = smov %s1106_s19 }
 0x2d2   : > { %s1442_s19 = smov %s1110_s20  ;;  %s1443_s20 = smov %s1197_s27 }
 0x2d3   : > { %s1444_s21 = smov %s1186_s24  ;;  %18 = sbr.rel (!%p16_p7) target bundleno = 4 (0x4), region = 80 }
 0x2da   :  { %826 = vsyncpa [#allocation3], 1 }
 0x2db   :  { %828 = vsyncpa [#allocation3 + $0x1], 1 }
 0x2dc   :  { %829 = vsyncpa [#allocation4], 1 }
 0x2dd   :  { %831 = vsyncpa [#allocation4 + $0x1], 1 }

</bundles_post_ra>
